<compile_context>
chip_gen: v5e
topology: v5e:2x2
jax: 0.10.0
libtpu: 0.0.40
codegen_flags: <defaults>
</compile_context>

<pallas_src>
import functools

import jax
import jax.numpy as jnp
import numpy as np
from jax.experimental import pallas as pl
from jax.experimental.pallas import tpu as pltpu


# ----------------------------------------------------------------------------
# Generation-aware tile selection
# ----------------------------------------------------------------------------
def _tpu_vmem_bytes():
    try:
        info = pltpu.get_tpu_info()
        for name in ("vmem_capacity_bytes", "vmem_size_bytes", "vmem_bytes"):
            v = getattr(info, name, None)
            if v:
                return int(v)
    except Exception:
        pass
    return 64 * 1024 * 1024            # conservative (v7x-sized) fallback


_VMEM_CAP = _tpu_vmem_bytes()
_VMEM_LIMIT = int(min(_VMEM_CAP * 3 // 4, 100 * 1024 * 1024))
_W_STREAM_BUDGET = int(min(_VMEM_CAP // 3, 32 * 1024 * 1024))  # double-buffered W stream


def _pick_tiles(K, N, w_itemsize):
    """Pick (tk, tn): prefer a full-N tile (lane-dense output, single write per
    (g, row-block)), shrink the K tile until the double-buffered weight stream
    fits the VMEM budget."""
    budget_elems = max(_W_STREAM_BUDGET // (2 * w_itemsize), 128 * 128)
    tn_cands = [N] + [c for c in (4096, 2048, 1024, 512, 256, 128)
                      if c < N and N % c == 0]
    tk_cands = [K] + [c for c in (2048, 1024, 512, 256, 128)
                      if c < K and K % c == 0]
    for tn in tn_cands:
        for tk in tk_cands:
            if tk * tn <= budget_elems:
                return tk, tn
    return tk_cands[-1], tn_cands[-1]


# ----------------------------------------------------------------------------
# Fused (grouped) linear kernel:  y[g] = act(x[g] @ W[g] + b[g])
#   grid = (G, N//tn, K//tk);  ("parallel", "parallel", "arbitrary")
#   weights streamed in bf16, f32 accumulation in VMEM scratch.
# ----------------------------------------------------------------------------
def _linear_kernel(x_ref, w_ref, b_ref, o_ref, acc_ref, *, act):
    k = pl.program_id(2)

    @pl.when(k == 0)
    def _():
        acc_ref[...] = jnp.zeros_like(acc_ref)

    w = w_ref[0]                                       # (tk, tn)
    acc_ref[...] += jnp.dot(x_ref[0].astype(w.dtype), w,
                            preferred_element_type=jnp.float32)

    @pl.when(k == pl.num_programs(2) - 1)
    def _():
        h = acc_ref[...] + b_ref[0]
        if act == "relu":
            h = jnp.maximum(h, 0.0)
        elif act == "leaky":                           # LeakyReLU(0.1)
            h = jnp.where(h > 0.0, h, 0.1 * h)
        o_ref[...] = h[None].astype(o_ref.dtype)


def pallas_linear(x, w, b, act="none"):
    """y = act(x @ w + b).
    x: (M, K) or (G, M, K);  w: (K, N) or (G, K, N);  b: (N,) or (G, N)."""
    squeeze = (x.ndim == 2)
    if squeeze:
        x, w, b = x[None], w[None], b[None]
    G, M, K = x.shape
    Gw, K2, N = w.shape
    assert K == K2 and Gw == G
    b3 = b.reshape(G, 1, N).astype(jnp.float32)

    tk, tn = _pick_tiles(K, N, w.dtype.itemsize)
    grid = (G, N // tn, K // tk)

    out = pl.pallas_call(
        functools.partial(_linear_kernel, act=act),
        out_shape=jax.ShapeDtypeStruct((G, M, N), jnp.float32),
        grid_spec=pltpu.PrefetchScalarGridSpec(
            num_scalar_prefetch=0,
            grid=grid,
            in_specs=[
                pl.BlockSpec((1, M, tk), lambda g, j, k: (g, 0, k)),
                pl.BlockSpec((1, tk, tn), lambda g, j, k: (g, k, j)),
                pl.BlockSpec((1, 1, tn), lambda g, j, k: (g, 0, j)),
            ],
            out_specs=pl.BlockSpec((1, M, tn), lambda g, j, k: (g, 0, j)),
            scratch_shapes=[pltpu.VMEM((M, tn), jnp.float32)],
        ),
        compiler_params=pltpu.CompilerParams(
            dimension_semantics=("parallel", "parallel", "arbitrary"),
            vmem_limit_bytes=_VMEM_LIMIT),
    )(x, w, b3)
    return out[0] if squeeze else out


# ----------------------------------------------------------------------------
# UnweightedNeRF decoder: segment-tiled, scalar-prefetched weight selection.
#   grid = (num_point_tiles,) "parallel"; each tile uses weights[seg_id[tile]].
#   No mask, no accumulation, lane-dense (128-wide) output.
# ----------------------------------------------------------------------------
def _decoder_kernel(seg_ref, x_ref, w1, b1, w2, b2, w3, b3, w4, b4, o_ref):
    del seg_ref                       # consumed only by the BlockSpec index_maps

    def layer(h, w_ref, b_ref):
        z = jnp.dot(h, w_ref[0], preferred_element_type=jnp.float32) + b_ref[0]
        return jnp.maximum(z, 0.0)    # F.relu after every layer (matches reference)

    h = layer(x_ref[...], w1, b1)
    h = layer(h, w2, b2)
    h = layer(h, w3, b3)
    h = layer(h, w4, b4)              # (tile, 128) lane-dense (zero-padded cols)
    o_ref[...] = h.astype(o_ref.dtype)


def pallas_decoder(pos_enc, index, weights, biases, tile=128):
    """weights[i]: (B, out_i, in_i) hyper-generated; biases[i]: (B, out_i, 1)."""
    N, D = pos_enc.shape
    B = weights[0].shape[0]
    out_dim = weights[-1].shape[1]                    # 4
    hid = weights[1].shape[1]                         # 64
    D_pad = max(64, -(-D // 64) * 64)                 # 39 -> 64
    OUT_PAD = 128                                     # lane-dense final store

    # Pre-transpose to (B, in, out) (hoists the per-tile XLU transpose out of the
    # kernel) and zero-pad the ragged in/out dims.
    def prep(w, b, pad_in=None, pad_out=None):
        wt = jnp.transpose(w, (0, 2, 1)).astype(jnp.float32)   # (B, in, out)
        bt = jnp.transpose(b, (0, 2, 1)).astype(jnp.float32)   # (B, 1, out)
        if pad_in is not None:
            wt = jnp.pad(wt, ((0, 0), (0, pad_in - wt.shape[1]), (0, 0)))
        if pad_out is not None:
            wt = jnp.pad(wt, ((0, 0), (0, 0), (0, pad_out - wt.shape[2])))
            bt = jnp.pad(bt, ((0, 0), (0, 0), (0, pad_out - bt.shape[2])))
        return wt, bt

    w1, b1 = prep(weights[0], biases[0], pad_in=D_pad)          # (B, D_pad, 64)
    w2, b2 = prep(weights[1], biases[1])                        # (B, 64, 64)
    w3, b3 = prep(weights[2], biases[2])                        # (B, 64, 64)
    w4, b4 = prep(weights[3], biases[3], pad_out=OUT_PAD)       # (B, 64, 128)

    # Host-side segment schedule: group points by index value, pad each group to
    # a tile multiple, record where each original point lands.  Tiles of the
    # same segment are consecutive, so Pallas keeps the segment's weights
    # resident and skips the re-DMA between those grid steps.
    # TODO(synk): requires a concrete `index` (not a traced value under jit);
    # under jit the schedule must be precomputed outside and passed in.
    idx_np = np.asarray(jax.device_get(index)).astype(np.int64)
    assert idx_np.shape == (N,) and idx_np.min() >= 0 and idx_np.max() < B
    gather, tile_seg = [], []
    out_pos = np.zeros(N, np.int32)
    row = 0
    for b in range(B):
        rows = np.nonzero(idx_np == b)[0]
        if rows.size == 0:
            continue
        n_tiles = int(np.ceil(rows.size / tile))
        padded = np.concatenate(
            [rows, np.full(n_tiles * tile - rows.size, rows[-1], np.int64)])
        gather.append(padded)
        tile_seg.extend([b] * n_tiles)
        out_pos[rows] = row + np.arange(rows.size, dtype=np.int32)
        row += padded.size
    gather = np.concatenate(gather)
    tile_seg = jnp.asarray(np.asarray(tile_seg, np.int32))
    num_tiles = int(tile_seg.shape[0])

    x = jnp.pad(pos_enc.astype(jnp.float32), ((0, 0), (0, D_pad - D)))[gather]

    padded_out = pl.pallas_call(
        _decoder_kernel,
        out_shape=jax.ShapeDtypeStruct((num_tiles * tile, OUT_PAD), jnp.float32),
        grid_spec=pltpu.PrefetchScalarGridSpec(
            num_scalar_prefetch=1,
            grid=(num_tiles,),
            in_specs=[
                pl.BlockSpec((tile, D_pad), lambda i, seg: (i, 0)),
                pl.BlockSpec((1, D_pad, hid), lambda i, seg: (seg[i], 0, 0)),
                pl.BlockSpec((1, 1, hid), lambda i, seg: (seg[i], 0, 0)),
                pl.BlockSpec((1, hid, hid), lambda i, seg: (seg[i], 0, 0)),
                pl.BlockSpec((1, 1, hid), lambda i, seg: (seg[i], 0, 0)),
                pl.BlockSpec((1, hid, hid), lambda i, seg: (seg[i], 0, 0)),
                pl.BlockSpec((1, 1, hid), lambda i, seg: (seg[i], 0, 0)),
                pl.BlockSpec((1, hid, OUT_PAD), lambda i, seg: (seg[i], 0, 0)),
                pl.BlockSpec((1, 1, OUT_PAD), lambda i, seg: (seg[i], 0, 0)),
            ],
            out_specs=pl.BlockSpec((tile, OUT_PAD), lambda i, seg: (i, 0)),
        ),
        compiler_params=pltpu.CompilerParams(
            dimension_semantics=("parallel",)),
    )(tile_seg, x, w1, b1, w2, b2, w3, b3, w4, b4)

    return padded_out[out_pos, :out_dim]


# ----------------------------------------------------------------------------
# Parameters (weights stored bf16 for HBM streaming; biases f32)
# ----------------------------------------------------------------------------
def init_linear(key, fan_in, fan_out, dtype=jnp.bfloat16):
    kw, kb = jax.random.split(key)
    w = (jax.random.normal(kw, (fan_in, fan_out), jnp.float32)
         * (1.0 / np.sqrt(fan_in))).astype(dtype)
    b = jax.random.normal(kb, (fan_out,), jnp.float32) * 0.01
    return w, b


def init_encoder(key):
    k1, k2 = jax.random.split(key)
    return {"patch": init_linear(k1, 48, 128),      # 4x4 patch * 3 channels
            "fc": init_linear(k2, 128, 512)}


def global_encoder(params, im):
    # TODO(synk): torchvision ResNet34 (pretrained) backbone cannot be reproduced
    # without its checkpoint; replaced by a deterministic patch-embed -> mean-pool
    # -> linear stub producing the same (B, 512) global feature.
    B, C, H, W = im.shape
    P = 4
    x = jnp.transpose(im, (0, 2, 3, 1))                                  # NHWC
    x = x.reshape(B, H // P, P, W // P, P, C)
    x = jnp.transpose(x, (0, 1, 3, 2, 4, 5)).reshape(
        B * (H // P) * (W // P), P * P * C)                              # (B*Np, 48)
    h = pallas_linear(x, *params["patch"], act="relu")                   # (B*Np, 128)
    h = h.reshape(B, -1, h.shape[-1]).mean(axis=1)                       # (B, 128)
    return pallas_linear(h, *params["fc"], act="relu")                   # (B, 512)


def _head3_layout(hyper_dims_w, hyper_dims_b):
    """Group the 8 ragged output heads into consecutive runs sharing a common
    128-padded output width (lane-dense stores, fewer kernel launches)."""
    dims = list(hyper_dims_w) + list(hyper_dims_b)
    outs = [d[0] * d[1] for d in dims]
    pads = [max(128, -(-o // 128) * 128) for o in outs]
    groups, s = [], 0
    for i in range(1, len(outs) + 1):
        if i == len(outs) or pads[i] != pads[s]:
            groups.append((s, i, pads[s]))
            s = i
    return dims, outs, groups


def init_hypernets(key, hyper_dims_w, hyper_dims_b, in_size=512,
                   hidden=1024, head_hidden=4096):
    """Both hypernetworks, stored pre-fused / pre-stacked for grouped matmuls.
    Group order everywhere: net 0 = weight-hypernet heads 0..3, net 1 = bias-net."""
    n_heads = len(hyper_dims_w)
    keys = iter(jax.random.split(key, 64))

    # init-block layer 1: both nets consume the same `feat` -> fuse along N
    wa, ba = init_linear(next(keys), in_size, hidden)
    wb, bb = init_linear(next(keys), in_size, hidden)
    init1 = (jnp.concatenate([wa, wb], axis=1), jnp.concatenate([ba, bb]))

    # init-block layer 2: same shape in both nets -> grouped (G=2)
    p = [init_linear(next(keys), hidden, hidden) for _ in range(2)]
    init2 = (jnp.stack([q[0] for q in p]), jnp.stack([q[1] for q in p]))

    # head layer 1 (hidden -> 4096): 4 heads share each net's input
    #   -> fuse along N within a net, group over the 2 nets
    h1w, h1b = [], []
    for _net in range(2):
        ws, bs = zip(*[init_linear(next(keys), hidden, head_hidden)
                       for _ in range(n_heads)])
        h1w.append(jnp.concatenate(ws, axis=1))
        h1b.append(jnp.concatenate(bs))
    head1 = (jnp.stack(h1w), jnp.stack(h1b))          # (2, 1024, 4*4096)

    # head layer 2 (4096 -> 4096): identical shape for all 8 heads -> grouped (G=8)
    p = [init_linear(next(keys), head_hidden, head_hidden)
         for _ in range(2 * n_heads)]
    head2 = (jnp.stack([q[0] for q in p]), jnp.stack([q[1] for q in p]))

    # head layer 3 (4096 -> d0*d1): ragged widths grouped into runs with a
    # common 128-padded width (zero-padded extra cols are sliced off later).
    dims, outs, groups = _head3_layout(hyper_dims_w, hyper_dims_b)
    head3 = []
    for (s, e, npad) in groups:
        ws, bs = [], []
        for h in range(s, e):
            w, b = init_linear(next(keys), head_hidden, outs[h])
            ws.append(jnp.pad(w, ((0, 0), (0, npad - outs[h]))))
            bs.append(jnp.pad(b, ((0, npad - outs[h]),)))
        head3.append((jnp.stack(ws), jnp.stack(bs)))   # (G, 4096, npad), (G, npad)

    return {"init1": init1, "init2": init2, "head1": head1,
            "head2": head2, "head3": head3}


def hyper_networks(params, feat, hyper_dims_w, hyper_dims_b):
    B = feat.shape[0]
    hidden = params["init2"][0].shape[-1]             # 1024
    head_hidden = params["head2"][0].shape[-2]        # 4096
    n_heads = len(hyper_dims_w)

    h1 = pallas_linear(feat, *params["init1"], act="relu")       # (B, 2*hidden)
    h1 = jnp.stack([h1[:, :hidden], h1[:, hidden:]])             # (2, B, hidden)
    h2 = pallas_linear(h1, *params["init2"], act="relu")         # (2, B, hidden)
    g1 = pallas_linear(h2, *params["head1"], act="relu")         # (2, B, 4*4096)
    g1 = g1.reshape(2, B, n_heads, head_hidden).transpose(0, 2, 1, 3)
    g1 = g1.reshape(2 * n_heads, B, head_hidden)                 # (8, B, 4096)
    g2 = pallas_linear(g1, *params["head2"], act="relu")         # (8, B, 4096)

    dims, outs, groups = _head3_layout(hyper_dims_w, hyper_dims_b)
    flat = [None] * len(dims)
    for (s, e, _npad), (w, b) in zip(groups, params["head3"]):
        o = pallas_linear(g2[s:e], w, b, act="leaky")            # (e-s, B, npad)
        for gi, h in enumerate(range(s, e)):
            flat[h] = o[gi, :, :outs[h]].reshape(B, dims[h][0], dims[h][1])
    return flat[:n_heads], flat[n_heads:]


def positional_encoding(x, num_encoding_functions=6, include_input=True,
                        log_sampling=True):
    enc = [x] if include_input else []
    if log_sampling:
        freqs = 2.0 ** np.linspace(0.0, num_encoding_functions - 1,
                                   num_encoding_functions, dtype=np.float32)
    else:
        freqs = np.linspace(2.0 ** 0.0, 2.0 ** (num_encoding_functions - 1),
                            num_encoding_functions, dtype=np.float32)
    for f in freqs:
        enc.append(jnp.sin(x * f))
        enc.append(jnp.cos(x * f))
    return enc[0] if len(enc) == 1 else jnp.concatenate(enc, axis=-1)


def hyper_model_forward(enc_params, hyper_params, hyper_dim_weights,
                        hyper_dim_biases, im, positions, index,
                        num_encoding_functions=6):
    feat = global_encoder(enc_params, im)                              # (B, 512)
    weights, biases = hyper_networks(hyper_params, feat,
                                     hyper_dim_weights, hyper_dim_biases)
    pos_enc = positional_encoding(positions, num_encoding_functions)   # (N, 39)
    return pallas_decoder(pos_enc, index, weights, biases)             # (N, 4)


# ----------------------------------------------------------------------------
if __name__ == "__main__":
    key = jax.random.PRNGKey(0)
    k_enc, k_hyp, k_im, k_pos = jax.random.split(key, 4)

    num_enc = 6
    hyper_dim_weights = [[64, 3 + 3 * 2 * num_enc], [64, 64], [64, 64], [4, 64]]
    hyper_dim_biases = [[64, 1], [64, 1], [64, 1], [4, 1]]

    enc_params = init_encoder(k_enc)
    hyper_params = init_hypernets(k_hyp, hyper_dim_weights, hyper_dim_biases)

    B, H, W = 2, 16, 16
    N_pts = 256
    im = jax.random.normal(k_im, (B, 3, H, W), jnp.float32)
    positions = jax.random.uniform(k_pos, (N_pts, 3), jnp.float32,
                                   minval=-1.0, maxval=1.0)
    index = jnp.concatenate([jnp.zeros(N_pts // 2, jnp.int32),
                             jnp.ones(N_pts - N_pts // 2, jnp.int32)])

    out = hyper_model_forward(enc_params, hyper_params, hyper_dim_weights,
                              hyper_dim_biases, im, positions, index, num_enc)
    out = jax.block_until_ready(out)

    assert out.shape == (N_pts, 4), out.shape
    assert bool(jnp.all(jnp.isfinite(out)))
    print("KERNEL_OK")
</pallas_src>

<mosaic_0001>
module attributes {stable_mosaic.version = 11 : i64} {
  func.func @_linear_kernel(%arg0: i32, %arg1: i32, %arg2: i32, %arg3: memref<1x32x48xf32, #tpu.memory_space<vmem>>, %arg4: memref<1x48x128xbf16, #tpu.memory_space<vmem>>, %arg5: memref<1x1x128xf32, #tpu.memory_space<vmem>>, %arg6: memref<1x32x128xf32, #tpu.memory_space<vmem>>, %arg7: memref<32x128xf32, #tpu.memory_space<vmem>>) attributes {dimension_semantics = [#tpu.dimension_semantics<parallel>, #tpu.dimension_semantics<parallel>, #tpu.dimension_semantics<arbitrary>], iteration_bounds = array<i64: 1, 1, 1>, scalar_prefetch = 0 : i64, scratch_operands = 1 : i64, tpu.core_type = #tpu.core_type<tc>, window_params = [{transform_indices = @transform_0, window_bounds = array<i64: 1, 32, 48>}, {transform_indices = @transform_1, window_bounds = array<i64: 1, 48, 128>}, {transform_indices = @transform_2, window_bounds = array<i64: 1, 1, 128>}, {transform_indices = @transform_3, window_bounds = array<i64: 1, 32, 128>}]} {
    %c0_i32 = arith.constant 0 : i32
    %0 = arith.cmpi eq, %arg2, %c0_i32 : i32
    %1 = arith.extui %0 : i1 to i32
    %c0_i32_0 = arith.constant 0 : i32
    %2 = arith.cmpi ne, %1, %c0_i32_0 : i32
    scf.if %2 {
      %cst_12 = arith.constant 0.000000e+00 : f32
      %15 = vector.broadcast %cst_12 : f32 to vector<32x128xf32>
      %c0_13 = arith.constant 0 : index
      %c0_14 = arith.constant 0 : index
      %16 = vector.load %arg7[%c0_13, %c0_14] : memref<32x128xf32, #tpu.memory_space<vmem>>, vector<32x128xf32>
      tpu.vector_store %arg7[%c0_13, %c0_14], %15 {strides = array<i32>} : memref<32x128xf32, #tpu.memory_space<vmem>>, vector<32x128xf32>,
    } else {
    }
    %c0 = arith.constant 0 : index
    %c0_1 = arith.constant 0 : index
    %c0_2 = arith.constant 0 : index
    %3 = vector.load %arg4[%c0, %c0_1, %c0_2] : memref<1x48x128xbf16, #tpu.memory_space<vmem>>, vector<1x48x128xbf16>
    %4 = vector.shape_cast %3 : vector<1x48x128xbf16> to vector<48x128xbf16>
    %c0_3 = arith.constant 0 : index
    %c0_4 = arith.constant 0 : index
    %5 = vector.load %arg7[%c0_3, %c0_4] : memref<32x128xf32, #tpu.memory_space<vmem>>, vector<32x128xf32>
    %c0_5 = arith.constant 0 : index
    %c0_6 = arith.constant 0 : index
    %c0_7 = arith.constant 0 : index
    %6 = vector.load %arg3[%c0_5, %c0_6, %c0_7] : memref<1x32x48xf32, #tpu.memory_space<vmem>>, vector<1x32x48xf32>
    %7 = vector.shape_cast %6 : vector<1x32x48xf32> to vector<32x48xf32>
    %8 = arith.truncf %7 : vector<32x48xf32> to vector<32x48xbf16>
    %cst = arith.constant dense<0.000000e+00> : vector<32x128xf32>
    %9 = tpu.matmul %8, %4, %cst {dimension_numbers = #tpu.dot_dimension_numbers<[1], [0], [0], [1], [0, 0, 1, 1], [], []>} : vector<32x48xbf16>, vector<48x128xbf16>, vector<32x128xf32> -> vector<32x128xf32>
    %10 = arith.addf %5, %9 : vector<32x128xf32>
    %c0_8 = arith.constant 0 : index
    %c0_9 = arith.constant 0 : index
    %11 = vector.load %arg7[%c0_8, %c0_9] : memref<32x128xf32, #tpu.memory_space<vmem>>, vector<32x128xf32>
    tpu.vector_store %arg7[%c0_8, %c0_9], %10 {strides = array<i32>} : memref<32x128xf32, #tpu.memory_space<vmem>>, vector<32x128xf32>,
    %c0_i32_10 = arith.constant 0 : i32
    %12 = arith.cmpi eq, %arg2, %c0_i32_10 : i32
    %13 = arith.extui %12 : i1 to i32
    %c0_i32_11 = arith.constant 0 : i32
    %14 = arith.cmpi ne, %13, %c0_i32_11 : i32
    scf.if %14 {
      %c0_12 = arith.constant 0 : index
      %c0_13 = arith.constant 0 : index
      %15 = vector.load %arg7[%c0_12, %c0_13] : memref<32x128xf32, #tpu.memory_space<vmem>>, vector<32x128xf32>
      %c0_14 = arith.constant 0 : index
      %c0_15 = arith.constant 0 : index
      %c0_16 = arith.constant 0 : index
      %16 = vector.load %arg5[%c0_14, %c0_15, %c0_16] : memref<1x1x128xf32, #tpu.memory_space<vmem>>, vector<1x1x128xf32>
      %17 = vector.shape_cast %16 : vector<1x1x128xf32> to vector<1x128xf32>
      %18 = vector.broadcast %17 : vector<1x128xf32> to vector<32x128xf32>
      %19 = arith.addf %15, %18 : vector<32x128xf32>
      %cst_17 = arith.constant 0.000000e+00 : f32
      %20 = vector.broadcast %cst_17 : f32 to vector<32x128xf32>
      %21 = arith.maximumf %19, %20 : vector<32x128xf32>
      %22 = vector.shape_cast %21 : vector<32x128xf32> to vector<1x32x128xf32>
      %c0_18 = arith.constant 0 : index
      %c0_19 = arith.constant 0 : index
      %c0_20 = arith.constant 0 : index
      %23 = vector.load %arg6[%c0_18, %c0_19, %c0_20] : memref<1x32x128xf32, #tpu.memory_space<vmem>>, vector<1x32x128xf32>
      tpu.vector_store %arg6[%c0_18, %c0_19, %c0_20], %22 {strides = array<i32>} : memref<1x32x128xf32, #tpu.memory_space<vmem>>, vector<1x32x128xf32>,
    } else {
    }
    return
  }
  func.func @transform_0(%arg0: i32, %arg1: i32, %arg2: i32) -> (i32, i32, i32) {
    %c0_i32 = arith.constant 0 : i32
    %c0_i32_0 = arith.constant 0 : i32
    return %arg0, %c0_i32, %arg2 : i32, i32, i32
  }
  func.func @transform_1(%arg0: i32, %arg1: i32, %arg2: i32) -> (i32, i32, i32) {
    %c0_i32 = arith.constant 0 : i32
    return %arg0, %arg2, %arg1 : i32, i32, i32
  }
  func.func @transform_2(%arg0: i32, %arg1: i32, %arg2: i32) -> (i32, i32, i32) {
    %c0_i32 = arith.constant 0 : i32
    %c0_i32_0 = arith.constant 0 : i32
    return %arg0, %c0_i32, %arg1 : i32, i32, i32
  }
  func.func @transform_3(%arg0: i32, %arg1: i32, %arg2: i32) -> (i32, i32, i32) {
    %c0_i32 = arith.constant 0 : i32
    %c0_i32_0 = arith.constant 0 : i32
    return %arg0, %c0_i32, %arg1 : i32, i32, i32
  }
}

</mosaic_0001>

<bundles_post_ra>
// kernel: tpu_custom_call.1
= control target key start
LH: loop header
LB: loop body
LE: loop exit
PB: predicated region body
PF: predicated region fallthrough
CT: control target
= control target key end

     0   :  { %8 = vsyncpa [#allocation4], 0  ;;  %s318_s0 = inlined_call_operand.hbm [shape: f32[1,32,48], index: 0, kind: input, shape index: {}]   ;;  %s319_s1 = inlined_call_operand.hbm [shape: bf16[1,48,128], index: 1, kind: input, shape index: {}]   ;;  %s320_s2 = inlined_call_operand.vmem [shape: f32[1,1,128], index: 2, kind: input, shape index: {}]   ;;  %s321_s3 = inlined_call_operand.hbm [shape: f32[1,32,128], index: 3, kind: output, shape index: {}]  }
   0x1   :  { %9 = vsyncpa [#allocation7], 0 }
   0x2   :  { %10 = vsyncpa [#allocation5], 0  ;;  %s15_s14 = sshll.u32 %s318_s0, 4  ;;  %s273_s15 = smov [#allocation3]   ;;  %s16_s14 = int_to_ptr.hbm [resolvable:$true] %s15_s14 }
   0x3   :  { %s17_s16 = sshll.u32 %s273_s15, 4  ;;  %s28_s19 = sshll.u32 %s319_s1, 4  ;;  %s18_s16 = int_to_ptr.vmem [resolvable:$true] %s17_s16  ;;  %s29_s19 = int_to_ptr.hbm [resolvable:$true] %s28_s19 }
   0x4   :  { %s274_s20 = smov 128   ;;  %s275_s21 = smov 8  }
   0x5   :  { %23 = dma.hbm_to_vmem [thread:$0]  %s16_s14, 512, %s18_s16, [#allocation4], %s274_s20, %s274_s20, %s275_s21  }
   0x6   :  { %s276_s22 = smov [#allocation6]   ;;  %s277_s24 = smov 64  }
   0x7   :  { %s30_s23 = sshll.u32 %s276_s22, 4  ;;  %s278_s0 = smov 4   ;;  %s31_s23 = int_to_ptr.vmem [resolvable:$true] %s30_s23 }
   0x8   :  { %36 = dma.hbm_to_vmem [thread:$0]  %s29_s19, 384, %s31_s23, [#allocation7], %s277_s24, %s277_s24, %s278_s0  }
   0x9   :  { %267 = dma.done.wait [#allocation4], 512  }
   0xa   :  { %268 = vsyncadd [#allocation4], 4294966784 }
   0xb   :  { %269 = dma.done.wait [#allocation7], 384  }
   0xc   :  { %270 = vsyncadd [#allocation7], 4294966912  ;;  %v183_v0 = vld [vmem:[#allocation6 + $0x10] sm:$0xff]  ;;  %v182_v1 = vld [vmem:[#allocation6 + $0x8] sm:$0xff]  ;;  %vm90_vm0 = vcmask 392192   ;;  %s279_s26 = smov [#allocation8]  }
   0xd   :  { %102 = vmatpush.bf16.msra.mxu0 %v183_v0  ;;  %184 = vmatpush.bf16.msra.mxu1 %v183_v0  ;;  %v181_v2 = vld [vmem:[#allocation6] sm:$0xff]  ;;  %v67_v4 = vld [vmem:[#allocation3 + $0x8] sm:$0xff]  ;;  %v68_v5 = vld [vmem:[#allocation3 + $0x10] sm:$0xff]  ;;  %s151_s27 = sshll.u32 %s279_s26, 4  ;;  %s153_s30 = sshll.u32 %s321_s3, 4  ;;  %s152_s27 = int_to_ptr.vmem [resolvable:$true] %s151_s27  ;;  %s154_s30 = int_to_ptr.hbm [resolvable:$true] %s153_s30 }
   0xe   :  { %v66_v3 = vld [vmem:[#allocation3] sm:$0xff]  ;;  %v69_v6 = vld [vmem:[#allocation3 + $0x18] sm:$0xff] }
   0xf   :  { %v70_v7 = vpack.c.bf16 %v67_v4, %v66_v3  ;;  %v71_v8 = vpack.c.bf16 %v69_v6, %v68_v5  ;;  %v194_v9 = vld [vmem:[%s320_s2] ss:$0 sm:$0xff] }
  0x11   :  { %103 = vmatpush.bf16.msra.mxu0 %v182_v1  ;;  %185 = vmatpush.bf16.msra.mxu1 %v182_v1 }
  0x15   :  { %104 = vmatpush.bf16.msra.mxu0 %v181_v2  ;;  %186 = vmatpush.bf16.msra.mxu1 %v181_v2 }
  0x18   :  { %179 = vmatmul.msk.bf16.vlgmr.msra.gmra.mxu0 %vm90_vm0, %v70_v7  ;;  %180 = vmatmul.msk.bf16.vlgmr.msra.gmra.mxu1 %vm90_vm0, %v71_v8 }
  0x95   :  { %v106_v10 = vpop.f32.mrf.mxu0  ;;  %v111_v11 = vpop.f32.mrf.mxu1 }
  0x96   :  { %v135_v12 = vadd.f32 %v194_v9, %v106_v10  ;;  %v137_v13 = vadd.f32 %v194_v9, %v111_v11 }
  0x98   :  { %v139_v14 = vmax.f32 %v135_v12, 0.0  ;;  %v141_v15 = vmax.f32 %v137_v13, 0.0 }
  0x9a   :  { %143 = vst [vmem:[#allocation8] sm:$0xff] %v139_v14 }
  0x9b   :  { %145 = vst [vmem:[#allocation8 + $0x10] sm:$0xff] %v141_v15 }
  0x9d   :  { %v108_v16 = vpop.f32.mrf.mxu0  ;;  %v113_v17 = vpop.f32.mrf.mxu1 }
  0x9e   :  { %v136_v18 = vadd.f32 %v194_v9, %v108_v16  ;;  %v138_v19 = vadd.f32 %v194_v9, %v113_v17 }
  0xa0   :  { %v140_v20 = vmax.f32 %v136_v18, 0.0  ;;  %v142_v21 = vmax.f32 %v138_v19, 0.0 }
  0xa2   :  { %144 = vst [vmem:[#allocation8 + $0x8] sm:$0xff] %v140_v20 }
  0xa3   :  { %146 = vst [vmem:[#allocation8 + $0x18] sm:$0xff] %v142_v21 }
  0xa4   :  { %159 = dma.vmem_to_hbm [thread:$0]  %s152_s27, 512, %s154_s30, [#allocation5], %s274_s20, %s274_s20, %s275_s21  }
  0xa5   :  { %271 = dma.done.wait [#allocation5], 512  }
  0xa6   :  { %272 = vsyncadd [#allocation5], 4294966784 }
  0xa7   :  { %164 = vsyncpa [#allocation4], 1 }
  0xa8   :  { %165 = vsyncpa [#allocation7], 1 }
  0xa9   :  { %166 = vsyncpa [#allocation5], 1 }

</bundles_post_ra>
